<compile_context>
chip_gen: v7x
topology: tpu7x:2x2x1
jax: 0.10.0
libtpu: 0.0.40
codegen_flags: <defaults>
</compile_context>

<pallas_src>
import jax
import jax.numpy as jnp
import numpy as np
from jax import lax
from jax.experimental import pallas as pl
from jax.experimental.pallas import tpu as pltpu

F = 20            # feature dim fixed by the module (Linear(20,20), rand_weight (20,20))

# Row offsets inside the packed parameter slab (loads stay inside aligned tiles).
_ROW_W2 = 0       # rows  0:20 -> W2 = W.T @ rand_weight
_ROW_WT = 24      # rows 24:44 -> W.T
_ROW_TAIL = 40    # aligned 8-row tile whose tail holds both bias rows
_ROW_C = 44       # row 44     -> c = b @ rand_weight + 1
_ROW_B = 45       # row 45     -> b
_SLAB_ROWS = 48


def _forward_body(x, p_ref):
    """Shared forward math: x (N,20) + packed params -> scalar f32 result."""
    w2 = p_ref[pl.ds(_ROW_W2, F), :]          # (20, 20)  W.T @ R
    wt = p_ref[pl.ds(_ROW_WT, F), :]          # (20, 20)  W.T
    tail = p_ref[pl.ds(_ROW_TAIL, 8), :]      # (8, 20)   one aligned vld for both biases
    c = tail[_ROW_C - _ROW_TAIL:_ROW_C - _ROW_TAIL + 1, :]   # (1, 20)  b @ R + 1
    b = tail[_ROW_B - _ROW_TAIL:_ROW_B - _ROW_TAIL + 1, :]   # (1, 20)  b

    # y = relu((x @ W.T + b) @ R + 1) = relu(x @ W2 + c)   (matmuls 1+2 fused offline)
    y = jnp.maximum(jnp.dot(x, w2, preferred_element_type=jnp.float32) + c, 0.0)
    # z = linear(y) = y @ W.T + b   (same shared weights)
    z = jnp.dot(y, wt, preferred_element_type=jnp.float32) + b

    # Scalarized epilogue: only two reductions leave the vector domain.
    s = jnp.sum(z)          # final sum (pre-scale)
    q = jnp.sum(z * z)      # squared norm (pre-scale)

    # while norm > 1: z /= 2   <=>  one scale by 2**-k with
    #   k = smallest integer >= 0 s.t. q * 4**-k <= 1
    # Estimate via exponent-field extraction (no transcendentals):
    #   e = floor(log2(q)), k0 = ceil((e+1)/2) >= k, off by at most +1.
    qi = lax.bitcast_convert_type(q, jnp.int32)       # q >= 0 -> sign bit clear
    e = (qi >> 23) - 127
    k0 = jnp.where(q > 1.0, (e + 2) >> 1, 0)
    k0 = jnp.clip(k0, 0, 126)
    scale0 = lax.bitcast_convert_type((jnp.int32(127) - k0) << 23, jnp.float32)
    q0 = q * scale0 * scale0                          # exact: scale0 is a power of two
    adj_up = (q0 > 1.0).astype(jnp.int32)             # defensive; never fires for finite q
    adj_dn = jnp.logical_and(k0 > 0, q0 * 4.0 <= 1.0).astype(jnp.int32)  # one too many
    k = jnp.clip(k0 + adj_up - adj_dn, 0, 126)
    scale = lax.bitcast_convert_type((jnp.int32(127) - k) << 23, jnp.float32)

    # if norm_after < 0.8: z *= 10   (norm-squared form; scale^2 exact power of two)
    nq = q * scale * scale
    factor = jnp.where(nq < 0.64, 10.0, 1.0)

    # return z.sum()  (power-of-two scaling commutes exactly with the f32 sum)
    return s * scale * factor


def fancy_mlp_kernel(x_ref, p_ref, out_ref):
    """Single-evaluation kernel: x (N,20), params (48,20), out (1,1) SMEM scalar."""
    out_ref[0, 0] = _forward_body(x_ref[...], p_ref)


def fancy_mlp_batched_kernel(x_ref, p_ref, out_ref):
    """One grid step = one independent evaluation.

    x_ref : (1, N, 20) this evaluation's input
    p_ref : (48, 20)   packed params (constant index_map -> DMA'd once, resident)
    out_ref: (8, 128)  lane-dense VMEM slab; the scalar result is broadcast into it
                       (unmasked full-tile store); wrapper reads element [0, 0].
    """
    res = _forward_body(x_ref[0], p_ref)
    out_ref[...] = jnp.full((8, 128), res, dtype=jnp.float32)


def prepare_params(W, b, rand_weight):
    """One-time (construction-time) parameter fusion + packing into a VMEM slab."""
    wt = W.T.astype(jnp.float32)                       # (in, out) so kernel does x @ wt
    w2 = wt @ rand_weight.astype(jnp.float32)          # fused first-linear + R matmul
    c = b.astype(jnp.float32) @ rand_weight.astype(jnp.float32) + 1.0
    slab = jnp.zeros((_SLAB_ROWS, F), jnp.float32)
    slab = slab.at[_ROW_W2:_ROW_W2 + F, :].set(w2)
    slab = slab.at[_ROW_WT:_ROW_WT + F, :].set(wt)
    slab = slab.at[_ROW_C, :].set(c)
    slab = slab.at[_ROW_B, :].set(b.astype(jnp.float32))
    return slab


def fancy_mlp_forward(x, params):
    """Single forward pass (matches the module's forward exactly)."""
    n = x.shape[0]
    out = pl.pallas_call(
        fancy_mlp_kernel,
        out_shape=jax.ShapeDtypeStruct((1, 1), jnp.float32),
        in_specs=[
            pl.BlockSpec(memory_space=pltpu.VMEM),   # x
            pl.BlockSpec(memory_space=pltpu.VMEM),   # packed parameter slab
        ],
        out_specs=pl.BlockSpec(memory_space=pltpu.SMEM),
        cost_estimate=pl.CostEstimate(
            flops=2 * 2 * n * F * F,                 # two tiny matmuls
            transcendentals=0,                       # log2 replaced by exponent bits
            bytes_accessed=x.size * 4 + _SLAB_ROWS * F * 4 + 4,
        ),
    )(x, params)
    return out[0, 0]


def fancy_mlp_forward_batched(xs, params):
    """Many independent forward passes in ONE pallas_call (launch-overhead amortized).

    xs: (B, N, 20) -> (B,) of scalar results.
    """
    bsz, n, _ = xs.shape
    out = pl.pallas_call(
        fancy_mlp_batched_kernel,
        out_shape=jax.ShapeDtypeStruct((bsz * 8, 128), jnp.float32),
        grid=(bsz,),
        in_specs=[
            pl.BlockSpec((1, n, F), lambda i: (i, 0, 0)),          # per-eval input
            pl.BlockSpec((_SLAB_ROWS, F), lambda i: (0, 0)),       # params: resident
        ],
        out_specs=pl.BlockSpec((8, 128), lambda i: (i, 0)),        # per-eval result tile
        compiler_params=pltpu.CompilerParams(
            dimension_semantics=("parallel",)),                    # v7x: split across TCs
        cost_estimate=pl.CostEstimate(
            flops=2 * 2 * bsz * n * F * F,
            transcendentals=0,
            bytes_accessed=xs.size * 4 + _SLAB_ROWS * F * 4 + bsz * 8 * 128 * 4,
        ),
    )(xs, params)
    return out[::8, 0]


def _ref_forward(x, W, b, R):
    """Pure numpy reference matching the PyTorch module (for a sanity check)."""
    x = np.asarray(x, np.float32)
    W = np.asarray(W, np.float32)
    b = np.asarray(b, np.float32)
    R = np.asarray(R, np.float32)
    y = x @ W.T + b
    y = np.maximum(y @ R + 1.0, 0.0)
    y = y @ W.T + b
    while np.linalg.norm(y) > 1.0:
        y = y / 2.0
    if np.linalg.norm(y) < 0.8:
        y = y * 10.0
    return float(y.sum())


if __name__ == "__main__":
    N = 2  # small batch (rows of x), as implied by the module
    B = 3  # independent evaluations for the batched entry point

    key = jax.random.PRNGKey(0)
    kx, kw, kb, kr = jax.random.split(key, 4)

    # Deterministic synthetic parameters (shapes match FancyMLP.__init__):
    #   nn.Linear(20, 20): W ~ U(-1/sqrt(20), 1/sqrt(20)), b likewise
    #   rand_weight: torch.rand((20, 20)) ~ U(0, 1)
    bound = 1.0 / (F ** 0.5)
    W = jax.random.uniform(kw, (F, F), jnp.float32, -bound, bound)
    b = jax.random.uniform(kb, (F,), jnp.float32, -bound, bound)
    rand_weight = jax.random.uniform(kr, (F, F), jnp.float32, 0.0, 1.0)

    x = jax.random.normal(kx, (N, F), jnp.float32)
    xs = jax.random.normal(jax.random.PRNGKey(1), (B, N, F), jnp.float32)

    # Construction-time prep (hoisted out of the per-call path).
    params = jax.block_until_ready(prepare_params(W, b, rand_weight))

    # --- single-evaluation path (module forward) ---
    out = fancy_mlp_forward(x, params)
    jax.block_until_ready(out)
    ref = _ref_forward(x, W, b, rand_weight)
    np.testing.assert_allclose(float(out), ref, rtol=5e-3, atol=5e-3)

    # --- batched path: B independent forwards in one gridded call ---
    outs = jax.block_until_ready(fancy_mlp_forward_batched(xs, params))
    refs = np.array([_ref_forward(xs[i], W, b, rand_weight) for i in range(B)],
                    np.float32)
    np.testing.assert_allclose(np.asarray(outs), refs, rtol=5e-3, atol=5e-3)

    print("KERNEL_OK")
</pallas_src>

<mosaic_0001>
module attributes {stable_mosaic.version = 11 : i64} {
  func.func @fancy_mlp_kernel(%arg0: memref<2x20xf32, #tpu.memory_space<vmem>>, %arg1: memref<48x20xf32, #tpu.memory_space<vmem>>, %arg2: memref<1x1xf32, #tpu.memory_space<smem>>) attributes {dimension_semantics = [], scalar_prefetch = 0 : i64, scratch_operands = 0 : i64, tpu.core_type = #tpu.core_type<tc>} {
    %c0 = arith.constant 0 : index
    %c0_0 = arith.constant 0 : index
    %0 = vector.load %arg0[%c0, %c0_0] : memref<2x20xf32, #tpu.memory_space<vmem>>, vector<2x20xf32>
    %c0_1 = arith.constant 0 : index
    %c0_2 = arith.constant 0 : index
    %1 = vector.load %arg1[%c0_1, %c0_2] : memref<48x20xf32, #tpu.memory_space<vmem>>, vector<20x20xf32>
    %c24 = arith.constant 24 : index
    %c0_3 = arith.constant 0 : index
    %2 = vector.load %arg1[%c24, %c0_3] : memref<48x20xf32, #tpu.memory_space<vmem>>, vector<20x20xf32>
    %c40 = arith.constant 40 : index
    %c0_4 = arith.constant 0 : index
    %3 = vector.load %arg1[%c40, %c0_4] : memref<48x20xf32, #tpu.memory_space<vmem>>, vector<8x20xf32>
    %4 = vector.extract_strided_slice %3 {offsets = [4, 0], sizes = [1, 20], strides = [1, 1]} : vector<8x20xf32> to vector<1x20xf32>
    %5 = vector.extract_strided_slice %3 {offsets = [5, 0], sizes = [1, 20], strides = [1, 1]} : vector<8x20xf32> to vector<1x20xf32>
    %cst = arith.constant dense<0.000000e+00> : vector<2x20xf32>
    %6 = tpu.matmul %0, %1, %cst {dimension_numbers = #tpu.dot_dimension_numbers<[1], [0], [0], [1], [0, 0, 1, 1], [], []>} : vector<2x20xf32>, vector<20x20xf32>, vector<2x20xf32> -> vector<2x20xf32>
    %7 = vector.broadcast %4 : vector<1x20xf32> to vector<2x20xf32>
    %8 = arith.addf %6, %7 : vector<2x20xf32>
    %cst_5 = arith.constant 0.000000e+00 : f32
    %9 = vector.broadcast %cst_5 : f32 to vector<2x20xf32>
    %10 = arith.maximumf %8, %9 : vector<2x20xf32>
    %cst_6 = arith.constant dense<0.000000e+00> : vector<2x20xf32>
    %11 = tpu.matmul %10, %2, %cst_6 {dimension_numbers = #tpu.dot_dimension_numbers<[1], [0], [0], [1], [0, 0, 1, 1], [], []>} : vector<2x20xf32>, vector<20x20xf32>, vector<2x20xf32> -> vector<2x20xf32>
    %12 = vector.broadcast %5 : vector<1x20xf32> to vector<2x20xf32>
    %13 = arith.addf %11, %12 : vector<2x20xf32>
    %14 = vector.shape_cast %13 : vector<2x20xf32> to vector<1x2x20xf32>
    %cst_7 = arith.constant dense<0.000000e+00> : vector<1xf32>
    %15 = vector.multi_reduction <add>, %14, %cst_7 [1, 2] : vector<1x2x20xf32> to vector<1xf32>
    %16 = vector.shape_cast %15 : vector<1xf32> to vector<1x1x1xf32>
    %17 = vector.extract %16[0, 0, 0] : f32 from vector<1x1x1xf32>
    %18 = arith.mulf %13, %13 : vector<2x20xf32>
    %19 = vector.shape_cast %18 : vector<2x20xf32> to vector<1x2x20xf32>
    %cst_8 = arith.constant dense<0.000000e+00> : vector<1xf32>
    %20 = vector.multi_reduction <add>, %19, %cst_8 [1, 2] : vector<1x2x20xf32> to vector<1xf32>
    %21 = vector.shape_cast %20 : vector<1xf32> to vector<1x1x1xf32>
    %22 = vector.extract %21[0, 0, 0] : f32 from vector<1x1x1xf32>
    %23 = arith.bitcast %22 : f32 to i32
    %c23_i32 = arith.constant 23 : i32
    %24 = arith.shrsi %23, %c23_i32 : i32
    %c127_i32 = arith.constant 127 : i32
    %25 = arith.subi %24, %c127_i32 : i32
    %cst_9 = arith.constant 1.000000e+00 : f32
    %26 = arith.cmpf ogt, %22, %cst_9 : f32
    %c2_i32 = arith.constant 2 : i32
    %27 = arith.addi %25, %c2_i32 : i32
    %c1_i32 = arith.constant 1 : i32
    %28 = arith.shrsi %27, %c1_i32 : i32
    %c0_i32 = arith.constant 0 : i32
    %29 = arith.select %26, %28, %c0_i32 : i32
    %c0_i32_10 = arith.constant 0 : i32
    %c126_i32 = arith.constant 126 : i32
    %30 = arith.maxsi %c0_i32_10, %29 : i32
    %31 = arith.minsi %c126_i32, %30 : i32
    %c127_i32_11 = arith.constant 127 : i32
    %32 = arith.subi %c127_i32_11, %31 : i32
    %c23_i32_12 = arith.constant 23 : i32
    %33 = arith.shli %32, %c23_i32_12 : i32
    %34 = arith.bitcast %33 : i32 to f32
    %35 = arith.mulf %22, %34 : f32
    %36 = arith.mulf %35, %34 : f32
    %cst_13 = arith.constant 1.000000e+00 : f32
    %37 = arith.cmpf ogt, %36, %cst_13 : f32
    %38 = arith.extui %37 : i1 to i32
    %c0_i32_14 = arith.constant 0 : i32
    %39 = arith.cmpi sgt, %31, %c0_i32_14 : i32
    %cst_15 = arith.constant 4.000000e+00 : f32
    %40 = arith.mulf %36, %cst_15 : f32
    %cst_16 = arith.constant 1.000000e+00 : f32
    %41 = arith.cmpf ole, %40, %cst_16 : f32
    %42 = arith.andi %39, %41 : i1
    %43 = arith.extui %42 : i1 to i32
    %44 = arith.addi %31, %38 : i32
    %45 = arith.subi %44, %43 : i32
    %c0_i32_17 = arith.constant 0 : i32
    %c126_i32_18 = arith.constant 126 : i32
    %46 = arith.maxsi %c0_i32_17, %45 : i32
    %47 = arith.minsi %c126_i32_18, %46 : i32
    %c127_i32_19 = arith.constant 127 : i32
    %48 = arith.subi %c127_i32_19, %47 : i32
    %c23_i32_20 = arith.constant 23 : i32
    %49 = arith.shli %48, %c23_i32_20 : i32
    %50 = arith.bitcast %49 : i32 to f32
    %51 = arith.mulf %22, %50 : f32
    %52 = arith.mulf %51, %50 : f32
    %cst_21 = arith.constant 6.400000e-01 : f32
    %53 = arith.cmpf olt, %52, %cst_21 : f32
    %cst_22 = arith.constant 1.000000e+01 : f32
    %cst_23 = arith.constant 1.000000e+00 : f32
    %54 = arith.select %53, %cst_22, %cst_23 : f32
    %55 = arith.mulf %17, %50 : f32
    %56 = arith.mulf %55, %54 : f32
    %c0_24 = arith.constant 0 : index
    %c0_25 = arith.constant 0 : index
    %57 = memref.load %arg2[%c0_24, %c0_25] : memref<1x1xf32, #tpu.memory_space<smem>>
    memref.store %56, %arg2[%c0_24, %c0_25] : memref<1x1xf32, #tpu.memory_space<smem>>
    return
  }
}

</mosaic_0001>

<bundles_post_ra>
// kernel: tpu_custom_call.1
= control target key start
LH: loop header
LB: loop body
LE: loop exit
PB: predicated region body
PF: predicated region fallthrough
CT: control target
= control target key end

     0   :  { %v332_v2 = vmov 0.0|0.0   ;;  %vm333_vm0 = vmmov 0   ;;  %v334_v4 = vmov 0.0   ;;  %s392_s0 = inlined_call_operand.vmem [shape: f32[2,20], index: 0, kind: input, shape index: {}]   ;;  %s393_s1 = inlined_call_operand.vmem [shape: f32[48,20], index: 1, kind: input, shape index: {}]   ;;  %s394_s2 = inlined_call_operand.hbm [shape: f32[1,1], index: 2, kind: output, shape index: {}]  }
   0x1   :  { %v13_v0 = vld [vmem:[%s393_s1] sm:$0xff]  ;;  %v14_v1 = vld [vmem:[%s393_s1 + $0x8] sm:$0xff]  ;;  %303 = vmatprep.subr.bf16.mxu0 %v332_v2  ;;  %306 = vmatprep.subr.bf16.mxu1 %v332_v2 }
   0x2   :  { %v304_v3 = vpack.c.bf16 %v14_v1, %v13_v0  ;;  %291 = vmatprep.mubr.msk.f32.mxu0 %vm333_vm0, %v334_v4  ;;  %300 = vmatprep.mubr.msk.f32.mxu1 %vm333_vm0, %v334_v4 }
   0x3   :  { %7 = vsyncpa [#allocation3], 0  ;;  %v15_v5 = vld [vmem:[%s393_s1 + $0x10] sm:$0xf]  ;;  %vm28_vm1 = vcmask 1043456   ;;  %vm24_vm2 = vcmask 162816   ;;  %v20_v11 = vlaneseq }
   0x4   :  { %305 = vmatpush3.bf16.msra.mxu0 %v304_v3  ;;  %v12_v6 = vld [vmem:[%s392_s0] sm:$0x3]  ;;  %v16_v7 = vld [vmem:[%s393_s1 + $0x18] sm:$0xff]  ;;  %v18_v10 = vld [vmem:[%s393_s1 + $0x28] sm:$0xf]  ;;  %vm183_vm3 = vcmask 156672  }
   0x5   :  { %289 = vmatprep.subr.mxu0 %v334_v4  ;;  %v17_v8 = vld [vmem:[%s393_s1 + $0x20] sm:$0xff]  ;;  %v21_v12 = vshrl.u32 %v20_v11, 7  ;;  %v19_v14 = vld [vmem:[%s393_s1 + $0x28] sm:$0xff]  ;;  %s320_s18 = scalar_lea.hbm %s394_s2, 16 }
   0x6   :  { %v307_v9 = vpack.c.bf16 %v17_v8, %v16_v7  ;;  %p321_p7 = scmp.ne.s32.totalorder %s394_s2, %s320_s18  ;;  %p324_p8 = scmp.lt.u32.totalorder %s320_s18, %s394_s2 }
   0x7   :  { %v22_v13 = vsub.s32 4, %v21_v12  ;;  %v105_v20 = vsub.s32 5, %v21_v12 }
   0x8   :  { %290 = vmatpush3.msk.msra.mxu0 %vm28_vm1, %v15_v5  ;;  %308 = vmatpush3.bf16.msra.mxu1 %v307_v9  ;;  %p326_p9 = pnand %p324_p8, %p321_p7 }
   0x9   :  { %292 = vmatmul.mubr.msk.f32.vlgmr.msra.gmra.mrb[0].mxu0 %vm24_vm2, %v12_v6  ;;  %298 = vmatprep.subr.mxu1 %v334_v4  ;;  %v23_v15 = vrot.slane %v19_v14, %v22_v13  ;;  %v106_v21 = vrot.slane %v19_v14, %v105_v20 }
   0xc   :  { %299 = vmatpush3.msk.msra.mxu1 %vm28_vm1, %v18_v10 }
  0xdc   :  { %v98_v16 = vpop.f32.mrb[0].mxu0 }
  0xdd   :  { %v99_v17 = vadd.f32 %v98_v16, %v23_v15  ;;  %v293_v18 = vpop.f32.mrb[1].mxu0 }
  0xdf   :  { %v102_v19 = vmax.f32 %v99_v17, 0.0 }
  0xe1   :  { %301 = vmatmul.mubr.msk.f32.vlgmr.msra.gmra.mrb[0].mxu1 %vm24_vm2, %v102_v19 }
 0x1b4   :  { %v179_v22 = vpop.f32.mrb[0].mxu1 }
 0x1b5   :  { %v180_v23 = vadd.f32 %v179_v22, %v106_v21  ;;  %v302_v24 = vpop.f32.mrb[1].mxu1 }
 0x1b7   :  { %v184_v25 = vsel %vm183_vm3, %v180_v23, 0.0  ;;  %v194_v26 = vmul.f32 %v180_v23, %v180_v23 }
 0x1b8   :  { %185 = vadd.xlane.f32.xlu0 %v184_v25 }
 0x1b9   :  { %v195_v27 = vsel %vm183_vm3, %v194_v26, 0.0 }
 0x1bc   :  { %196 = vadd.xlane.f32.xlu0 %v195_v27 }
 0x245   :  { %v186_v28 = vpop.xlane.xlu0 %185 }
 0x246   :  { %v187_v29 = vrot.slane %v186_v28, 4 }
 0x248   :  { %v188_v30 = vadd.f32 %v187_v29, %v186_v28 }
 0x249   :  { %v197_v31 = vpop.xlane.xlu0 %196 }
 0x24a   :  { %v189_v32 = vrot.slane %v188_v30, 2  ;;  %v198_v33 = vrot.slane %v197_v31, 4 }
 0x24c   :  { %v199_v34 = vadd.f32 %v198_v33, %v197_v31  ;;  %v190_v35 = vadd.f32 %v189_v32, %v188_v30 }
 0x24e   :  { %v200_v36 = vrot.slane %v199_v34, 2  ;;  %v191_v37 = vrot.slane %v190_v35, 1 }
 0x250   :  { %v201_v38 = vadd.f32 %v200_v36, %v199_v34  ;;  %v192_v39 = vadd.f32 %v191_v37, %v190_v35 }
 0x252   :  { %309 = vpush %v192_v39  ;;  %v202_v40 = vrot.slane %v201_v38, 1 }
 0x254   :  { %v203_v41 = vadd.f32 %v202_v40, %v201_v38 }
 0x256   :  { %311 = vpush %v203_v41 }
 0x283   :  { %s377_s1 = spop %309 }
 0x287   :  { %s312_s24 = spop %311 }
 0x288   :  { %s206_s25 = sshra.s32 %s312_s24, 23  ;;  %p207_p0 = scmp.gt.f32.partialorder %s312_s24, 1.0 }
 0x289   :  { %s208_s26 = sadd.s32 4294967171, %s206_s25 }
 0x28a   :  { %s209_s27 = sshra.s32 %s208_s26, 1 }
 0x28b   :  { %s396_s27 = smov (!%p207_p0, %s209_s27), 0 }
 0x28c   :  { %p211_p1 = scmp.gt.s32.totalorder %s396_s27, 0 }
 0x28e   :  { %s398_s27 = smov (!%p211_p1, %s396_s27), 0 }
 0x28f   :  { %s215_s28 = ssub.s32 127, %s398_s27 }
 0x290   :  { %s216_s29 = sshll.u32 %s215_s28, 23 }
 0x291   :  { %s218_s30 = smul.f32 %s312_s24, %s216_s29 }
 0x293   :  { %s219_s3 = smul.f32 %s218_s30, %s216_s29 }
 0x295   :  { %p220_p2 = scmp.gt.f32.partialorder %s219_s3, 1.0  ;;  %s223_s4 = smul.f32 4.0, %s219_s3 }
 0x297   :  { %p224_p3 = scmp.le.f32.partialorder %s223_s4, 1.0 }
 0x298   :  { %s221_s5 = scalar_select %p220_p2, 1, 0 }
 0x299   :  { %p225_p4 = pnand %p224_p3, %p211_p1 }
 0x29a   :  { %s228_s7 = sadd.s32 %s221_s5, %s398_s27 }
 0x29b   :  { %s267_s6 = scalar_select %p225_p4, 0, 1 }
 0x29d   :  { %s229_s8 = ssub.s32 %s228_s7, %s267_s6 }
 0x29e   :  { %p230_p5 = scmp.gt.s32.totalorder %s229_s8, 0 }
 0x2a0   :  { %s400_s8 = smov (!%p230_p5, %s229_s8), 0 }
 0x2a1   :  { %s234_s9 = ssub.s32 127, %s400_s8 }
 0x2a2   :  { %s235_s10 = sshll.u32 %s234_s9, 23 }
 0x2a3   :  { %s237_s11 = smul.f32 %s312_s24, %s235_s10 }
 0x2a4   :  { %s241_s13 = smul.f32 %s377_s1, %s235_s10 }
 0x2a5   :  { %s238_s12 = smul.f32 %s237_s11, %s235_s10 }
 0x2a7   :  { %p239_p6 = scmp.lt.f32.partialorder %s238_s12, 0.64 }
 0x2a9   :  { %s240_s14 = scalar_select %p239_p6, 10.0, 1.0 }
 0x2ab   :  { %s242_s15 = smul.f32 %s241_s13, %s240_s14 }
 0x2ad   :  { %244 = sst [smem:[#allocation2]] %s242_s15 }
 0x2ae   :  { %329 = shalt.err (!%p326_p9)
}
 0x2af   :  { %s335_s0 = smov [#allocation2]  }
 0x2b0   :  { %252 = dma.smem_to_hbm %s335_s0, 16, %s394_s2, [#allocation3]  }
 0x2b1   :  { %330 = dma.done.wait [#allocation3], 16  }
 0x2b2   :  { %331 = vsyncadd [#allocation3], 4294967280 }
 0x2b3   :  { %256 = sfence }
 0x2b4   :  { %257 = vsyncpa [#allocation3], 1 }

</bundles_post_ra>
